<compile_context>
chip_gen: v5e
topology: v5e:2x2
jax: 0.10.0
libtpu: 0.0.40
codegen_flags: <defaults>
</compile_context>

<pallas_src>
import math
import functools

import jax
import jax.numpy as jnp
from jax.experimental import pallas as pl
from jax.experimental.pallas import tpu as pltpu


# ---------------------------------------------------------------------------
# Kernels
# ---------------------------------------------------------------------------
def _pe_add_kernel(x_ref, pe_ref, o_ref):
    # x_ref: (TILE_S, B, D); pe_ref: (TILE_S, 1, D) -> sublane broadcast over B.
    o_ref[...] = x_ref[...] + pe_ref[...]


def _pe_add_dropout_kernel(x_ref, pe_ref, bits_ref, o_ref, *, threshold, scale):
    # Train-mode forward: (x + pe) then inverted dropout (zero w.p. p,
    # survivors scaled by 1/(1-p)) — same semantics as torch.nn.Dropout(p).
    # bits are uniform int32 in [0, 2^31-1); keep iff bits >= threshold.
    y = x_ref[...] + pe_ref[...]
    keep = bits_ref[...] >= jnp.int32(threshold)
    o_ref[...] = jnp.where(keep, y * scale, 0.0).astype(o_ref.dtype)


# ---------------------------------------------------------------------------
# Parameter (buffer) construction — deterministic, matches the PyTorch __init__
# ---------------------------------------------------------------------------
def make_positional_encoding(d_model, max_len=5000, dtype=jnp.float32):
    position = jnp.arange(max_len, dtype=jnp.float32)[:, None]            # [L, 1]
    div_term = jnp.exp(
        jnp.arange(0, d_model, 2, dtype=jnp.float32)
        * (-math.log(10000.0) / d_model)
    )                                                                      # [D/2]
    pe = jnp.zeros((max_len, d_model), dtype=jnp.float32)
    pe = pe.at[:, 0::2].set(jnp.sin(position * div_term))
    pe = pe.at[:, 1::2].set(jnp.cos(position * div_term))
    # pe.unsqueeze(0).transpose(0, 1) -> [max_len, 1, d_model]
    return pe[:, None, :].astype(dtype)


# ---------------------------------------------------------------------------
# Tile-size selection: largest S-tile whose double-buffered VMEM footprint
# (with (8, 128) sublane/lane padding) fits the tightest generation's default
# scoped-VMEM budget (v5e: 16 MiB; also well under v7x's 32 MiB default).
# ---------------------------------------------------------------------------
def _round_up(n, m):
    return (n + m - 1) // m * m


def _choose_tile_s(S, B, D, itemsize, n_xlike, budget_bytes=12 * 1024 * 1024):
    xlike_row = _round_up(B, 8) * _round_up(D, 128) * itemsize   # one S-row of x/out/bits
    pe_row = 8 * _round_up(D, 128) * itemsize                    # one S-row of pe
    per_row = 2 * (n_xlike * xlike_row + pe_row)                 # x2: double buffering
    tile = max(1, budget_bytes // per_row)
    tile = min(tile, S)
    if tile > 8:
        tile -= tile % 8
    return int(tile)


# ---------------------------------------------------------------------------
# Wrapper
# ---------------------------------------------------------------------------
def positional_encoding_forward(x, pe, *, dropout_p=0.1, train=False, rng_key=None):
    """x: [S, B, D], pe: [max_len, 1, D] -> [S, B, D].

    In train mode pass a fresh `rng_key` every step so the dropout mask
    changes per step (matches torch.nn.Dropout semantics, not its RNG bits).
    """
    S, B, D = x.shape
    pe_s = pe[:S]                                     # [S, 1, D] — tiny glue slice

    use_dropout = bool(train) and float(dropout_p) > 0.0
    tile_s = _choose_tile_s(S, B, D, x.dtype.itemsize,
                            n_xlike=3 if use_dropout else 2)
    grid = (pl.cdiv(S, tile_s),)

    x_spec = pl.BlockSpec((tile_s, B, D), lambda i: (i, 0, 0))   # x / out / bits
    pe_spec = pl.BlockSpec((tile_s, 1, D), lambda i: (i, 0, 0))  # pe stays S*D traffic
    cparams = pltpu.CompilerParams(
        dimension_semantics=("parallel",),            # shard S-tiles across TCs on v7x
        vmem_limit_bytes=32 * 1024 * 1024,
    )

    if not use_dropout:
        # eval mode: dropout is identity -> fused broadcast-add only.
        return pl.pallas_call(
            _pe_add_kernel,
            out_shape=jax.ShapeDtypeStruct((S, B, D), x.dtype),
            grid=grid,
            in_specs=[x_spec, pe_spec],
            out_specs=x_spec,
            input_output_aliases={0: 0},              # write result in place of x
            compiler_params=cparams,
        )(x, pe_s)

    # train mode: add + inverted dropout fused in one kernel.
    if rng_key is None:
        rng_key = jax.random.PRNGKey(0)
    max31 = int(jnp.iinfo(jnp.int32).max)             # 2**31 - 1
    bits = jax.random.randint(rng_key, (S, B, D), 0, max31, dtype=jnp.int32)
    threshold = int(round(float(dropout_p) * max31))  # P(drop) = threshold / max31
    scale = 1.0 / (1.0 - float(dropout_p))

    kernel = functools.partial(_pe_add_dropout_kernel,
                               threshold=threshold, scale=scale)
    return pl.pallas_call(
        kernel,
        out_shape=jax.ShapeDtypeStruct((S, B, D), x.dtype),
        grid=grid,
        in_specs=[x_spec, pe_spec, x_spec],           # bits tiled exactly like x
        out_specs=x_spec,
        input_output_aliases={0: 0},
        compiler_params=cparams,
    )(x, pe_s, bits)


# ---------------------------------------------------------------------------
# Demo / self-test
# ---------------------------------------------------------------------------
if __name__ == "__main__":
    S, B, D = 8, 2, 32          # seq len, batch, embed dim (d_model)
    MAX_LEN = 64
    DROPOUT_P = 0.1

    key = jax.random.PRNGKey(0)
    x_key, drop_key = jax.random.split(key)
    x = jax.random.normal(x_key, (S, B, D), dtype=jnp.float32)
    pe = make_positional_encoding(D, max_len=MAX_LEN, dtype=jnp.float32)

    ref = x + pe[:S]

    # Eval-mode forward (dropout == identity): must match x + pe[:S].
    out_eval = positional_encoding_forward(x, pe, dropout_p=DROPOUT_P, train=False)
    out_eval = jax.block_until_ready(out_eval)
    assert out_eval.shape == (S, B, D)
    assert jnp.allclose(out_eval, ref, atol=1e-6, rtol=1e-6), "eval-mode mismatch"

    # Train-mode forward (fused add + inverted dropout).
    # NOTE: the random mask won't bit-match torch's RNG, but the semantics
    # (zero w.p. p, survivors scaled by 1/(1-p)) are identical.
    out_train = positional_encoding_forward(
        x, pe, dropout_p=DROPOUT_P, train=True, rng_key=drop_key
    )
    out_train = jax.block_until_ready(out_train)
    assert out_train.shape == (S, B, D)
    scaled_ref = ref / (1.0 - DROPOUT_P)
    match = jnp.isclose(out_train, scaled_ref, atol=1e-5, rtol=1e-5) | (out_train == 0.0)
    assert bool(jnp.all(match)), "train-mode dropout semantics mismatch"

    print("KERNEL_OK")
</pallas_src>

<mosaic_0001>
module attributes {stable_mosaic.version = 11 : i64} {
  func.func @_pe_add_kernel(%arg0: i32, %arg1: memref<8x2x32xf32, #tpu.memory_space<vmem>>, %arg2: memref<8x1x32xf32, #tpu.memory_space<vmem>>, %arg3: memref<8x2x32xf32, #tpu.memory_space<vmem>>) attributes {dimension_semantics = [#tpu.dimension_semantics<parallel>], iteration_bounds = array<i64: 1>, scalar_prefetch = 0 : i64, scratch_operands = 0 : i64, tpu.core_type = #tpu.core_type<tc>, window_params = [{transform_indices = @transform_0, window_bounds = array<i64: 8, 2, 32>}, {transform_indices = @transform_1, window_bounds = array<i64: 8, 1, 32>}, {transform_indices = @transform_2, window_bounds = array<i64: 8, 2, 32>}]} {
    %c0 = arith.constant 0 : index
    %c0_0 = arith.constant 0 : index
    %c0_1 = arith.constant 0 : index
    %0 = vector.load %arg1[%c0, %c0_0, %c0_1] : memref<8x2x32xf32, #tpu.memory_space<vmem>>, vector<8x2x32xf32>
    %c0_2 = arith.constant 0 : index
    %c0_3 = arith.constant 0 : index
    %c0_4 = arith.constant 0 : index
    %1 = vector.load %arg2[%c0_2, %c0_3, %c0_4] : memref<8x1x32xf32, #tpu.memory_space<vmem>>, vector<8x1x32xf32>
    %2 = vector.broadcast %1 : vector<8x1x32xf32> to vector<8x2x32xf32>
    %3 = arith.addf %0, %2 : vector<8x2x32xf32>
    %c0_5 = arith.constant 0 : index
    %c0_6 = arith.constant 0 : index
    %c0_7 = arith.constant 0 : index
    %4 = vector.load %arg3[%c0_5, %c0_6, %c0_7] : memref<8x2x32xf32, #tpu.memory_space<vmem>>, vector<8x2x32xf32>
    tpu.vector_store %arg3[%c0_5, %c0_6, %c0_7], %3 {strides = array<i32>} : memref<8x2x32xf32, #tpu.memory_space<vmem>>, vector<8x2x32xf32>,
    return
  }
  func.func @transform_0(%arg0: i32) -> (i32, i32, i32) {
    %c0_i32 = arith.constant 0 : i32
    %c0_i32_0 = arith.constant 0 : i32
    %c0_i32_1 = arith.constant 0 : i32
    return %arg0, %c0_i32, %c0_i32_0 : i32, i32, i32
  }
  func.func @transform_1(%arg0: i32) -> (i32, i32, i32) {
    %c0_i32 = arith.constant 0 : i32
    %c0_i32_0 = arith.constant 0 : i32
    %c0_i32_1 = arith.constant 0 : i32
    return %arg0, %c0_i32, %c0_i32_0 : i32, i32, i32
  }
  func.func @transform_2(%arg0: i32) -> (i32, i32, i32) {
    %c0_i32 = arith.constant 0 : i32
    %c0_i32_0 = arith.constant 0 : i32
    %c0_i32_1 = arith.constant 0 : i32
    return %arg0, %c0_i32, %c0_i32_0 : i32, i32, i32
  }
}

</mosaic_0001>

<bundles_post_ra>
// kernel: tpu_custom_call.1
= control target key start
LH: loop header
LB: loop body
LE: loop exit
PB: predicated region body
PF: predicated region fallthrough
CT: control target
= control target key end

     0   :  { %7 = vsyncpa [#allocation3], 0  ;;  %s238_s0 = inlined_call_operand.hbm [shape: f32[8,2,32], index: 0, kind: input, shape index: {}, may-alias: {0,2}]   ;;  %s239_s1 = inlined_call_operand.vmem [shape: f32[8,1,32], index: 1, kind: input, shape index: {}]   ;;  %s240_s2 = inlined_call_operand.hbm [shape: f32[8,2,32], index: 2, kind: output, shape index: {}, may-alias: {0,2}]  }
   0x1   :  { %8 = vsyncpa [#allocation4], 0  ;;  %s13_s11 = sshll.u32 %s238_s0, 4  ;;  %s168_s12 = smov [#allocation2]   ;;  %s14_s11 = int_to_ptr.hbm [resolvable:$true] %s13_s11 }
   0x2   :  { %s15_s13 = sshll.u32 %s168_s12, 4  ;;  %s169_s14 = smov 32   ;;  %s16_s13 = int_to_ptr.vmem [resolvable:$true] %s15_s13 }
   0x3   :  { %s170_s15 = smov 2  }
   0x4   :  { %21 = dma.hbm_to_vmem [thread:$0]  %s14_s11, 256, %s16_s13, [#allocation3], %s169_s14, %s169_s14, %s170_s15  }
   0x5   :  { %164 = dma.done.wait [#allocation3], 256  }
   0x6   :  { %165 = vsyncadd [#allocation3], 4294967040  ;;  %vm76_vm0 = vcmask 254976   ;;  %s171_s16 = smov [#allocation5]   ;;  %s91_s0 = sshll.u32 %s240_s2, 4  ;;  %s92_s0 = int_to_ptr.hbm [resolvable:$true] %s91_s0 }
   0x7   :  { %s193_s17 = sshll.u32 %s171_s16, 4  ;;  %v28_v0 = vld [vmem:[#allocation2] sm:$0x3]  ;;  %v29_v2 = vld [vmem:[#allocation2 + $0x2] sm:$0x3]  ;;  %s90_s17 = int_to_ptr.vmem [resolvable:$true] %s193_s17 }
   0x8   :  { %v108_v1 = vld [vmem:[%s239_s1] ss:$0 sm:$0xff]  ;;  %v109_v3 = vld [vmem:[%s239_s1 + $0x1] ss:$0 sm:$0xff]  ;;  %v30_v5 = vld [vmem:[#allocation2 + $0x4] sm:$0x3] }
   0x9   :  { %v68_v4 = vadd.f32 %v108_v1, %v28_v0  ;;  %v110_v6 = vld [vmem:[%s239_s1 + $0x2] ss:$0 sm:$0xff]  ;;  %v69_v7 = vadd.f32 %v109_v3, %v29_v2  ;;  %v31_v8 = vld [vmem:[#allocation2 + $0x6] sm:$0x3]  ;;  %v111_v9 = vld [vmem:[%s239_s1 + $0x3] ss:$0 sm:$0xff] }
   0xa   :  { %v70_v10 = vadd.f32 %v110_v6, %v30_v5  ;;  %v32_v11 = vld [vmem:[#allocation2 + $0x8] sm:$0x3]  ;;  %v71_v12 = vadd.f32 %v111_v9, %v31_v8  ;;  %v112_v13 = vld [vmem:[%s239_s1 + $0x4] ss:$0 sm:$0xff]  ;;  %v33_v14 = vld [vmem:[#allocation2 + $0xa] sm:$0x3] }
   0xb   :  { %77 = vst.msk [vmem:[#allocation5] sm:$0x3] %vm76_vm0, %v68_v4  ;;  %v113_v15 = vld [vmem:[%s239_s1 + $0x5] ss:$0 sm:$0xff]  ;;  %v72_v16 = vadd.f32 %v112_v13, %v32_v11  ;;  %v34_v17 = vld [vmem:[#allocation2 + $0xc] sm:$0x3] }
   0xc   :  { %78 = vst.msk [vmem:[#allocation5 + $0x2] sm:$0x3] %vm76_vm0, %v69_v7  ;;  %v73_v18 = vadd.f32 %v113_v15, %v33_v14  ;;  %v114_v19 = vld [vmem:[%s239_s1 + $0x6] ss:$0 sm:$0xff]  ;;  %v35_v20 = vld [vmem:[#allocation2 + $0xe] sm:$0x3] }
   0xd   :  { %79 = vst.msk [vmem:[#allocation5 + $0x4] sm:$0x3] %vm76_vm0, %v70_v10  ;;  %v115_v21 = vld [vmem:[%s239_s1 + $0x7] ss:$0 sm:$0xff]  ;;  %v74_v22 = vadd.f32 %v114_v19, %v34_v17 }
   0xe   :  { %80 = vst.msk [vmem:[#allocation5 + $0x6] sm:$0x3] %vm76_vm0, %v71_v12  ;;  %v75_v23 = vadd.f32 %v115_v21, %v35_v20 }
   0xf   :  { %81 = vst.msk [vmem:[#allocation5 + $0x8] sm:$0x3] %vm76_vm0, %v72_v16 }
  0x10   :  { %82 = vst.msk [vmem:[#allocation5 + $0xa] sm:$0x3] %vm76_vm0, %v73_v18 }
  0x11   :  { %83 = vst.msk [vmem:[#allocation5 + $0xc] sm:$0x3] %vm76_vm0, %v74_v22 }
  0x12   :  { %84 = vst.msk [vmem:[#allocation5 + $0xe] sm:$0x3] %vm76_vm0, %v75_v23 }
  0x13   :  { %97 = dma.vmem_to_hbm [thread:$0]  %s90_s17, 256, %s92_s0, [#allocation4], %s169_s14, %s169_s14, %s170_s15  }
  0x14   :  { %166 = dma.done.wait [#allocation4], 256  }
  0x15   :  { %167 = vsyncadd [#allocation4], 4294967040 }
  0x16   :  { %102 = vsyncpa [#allocation3], 1 }
  0x17   :  { %103 = vsyncpa [#allocation4], 1 }

</bundles_post_ra>
